<compile_context>
chip_gen: v7x
topology: tpu7x:2x2x1
jax: 0.10.0
libtpu: 0.0.40
codegen_flags: <defaults>
</compile_context>

<pallas_src>
import functools

import jax
import jax.numpy as jnp
from jax.experimental import pallas as pl
from jax.experimental.pallas import tpu as pltpu


def _round_up(x, m):
    return ((x + m - 1) // m) * m


def sx_forward_kernel(bounds_ref, starts_ref, lengths_ref, scale_ref,
                      user_ref, item_ref, pos_ref, o_ref, acc_ref, *, g):
    """One (B-tile, P-tile) grid step.

    bounds (SMEM prefetch)    : (nb, 2) int32   per-B-tile [lo_blk, hi_blk] over P blocks
    starts / lengths / scale  : (TB, 1) int32 / int32 / f32  (scale = (1-g)/bag_count)
    user_e / item_e           : (TB, D) f32    (resident over the P axis)
    pos_e                     : (TP, D) bf16   (streamed over the P axis, natural layout)
    o                         : (TB, 1) f32    cosine scores
    acc (scratch)             : (TB, D) f32    pooled-sum accumulator over P tiles
    """
    bi = pl.program_id(0)
    pi = pl.program_id(1)
    tb = starts_ref.shape[0]
    tp = pos_ref.shape[0]

    @pl.when(pi == 0)
    def _init():
        acc_ref[...] = jnp.zeros_like(acc_ref)

    # Sorted offsets: this B tile only touches P blocks in [lo, hi]; everything
    # else contributes zero membership and is skipped entirely (no MXU/VPU work,
    # and the clamped pos index_map means no DMA either).
    lo = bounds_ref[bi, 0]
    hi = bounds_ref[bi, 1]

    @pl.when((pi >= lo) & (pi <= hi))
    def _accumulate():
        # member[b, p] = start[b] <= (p + pi*tp) < start[b] + length[b],
        # done as a single unsigned range test: (p - (start - pi*tp)) <u length.
        start_rel = starts_ref[...] - pi * tp                          # (TB, 1) int32
        p_idx = jax.lax.broadcasted_iota(jnp.int32, (tb, tp), 1)       # lane iota
        rel_u = pltpu.bitcast(p_idx - start_rel, jnp.uint32)           # (TB, TP)
        len_u = pltpu.bitcast(lengths_ref[...], jnp.uint32)            # (TB, 1)
        member = (rel_u < len_u).astype(jnp.bfloat16)                  # 0/1 MXU weights

        # Pooled-sum partial: [TB, TP] @ [TP, D] -> [TB, D], bf16 in, f32 accumulate.
        acc_ref[...] += jnp.dot(member, pos_ref[...],
                                preferred_element_type=jnp.float32)

    @pl.when(pi == pl.num_programs(1) - 1)
    def _finalize():
        # (1-g) and 1/count are folded into `scale`, so the blend is one FMA.
        pooled = acc_ref[...] * scale_ref[...]                         # (TB, D) f32
        u = g * user_ref[...] + pooled                                 # f32 VPU math
        v = item_ref[...]

        dot = jnp.sum(u * v, axis=1, keepdims=True)                    # (TB, 1)
        un2 = jnp.sum(u * u, axis=1, keepdims=True)
        vn2 = jnp.sum(v * v, axis=1, keepdims=True)
        eps = jnp.float32(1e-8)
        # Matches F.cosine_similarity: dot / sqrt(clamp(|u|^2*|v|^2, eps^2)),
        # written as a multiply by rsqrt (EUP slot, off the VALU divide chain).
        o_ref[...] = dot * jax.lax.rsqrt(jnp.maximum(un2 * vn2, eps * eps))


def sx_forward(user_W, item_W, users, pos_items, pos_item_offsets, items, g,
               *, tb=256, tp=512):
    """SX.forward. Returns cosine scores, shape [B].

    Assumes pos_item_offsets is sorted non-decreasing and covers [0, P)
    (the torch EmbeddingBag contract).
    """
    B = int(users.shape[0])
    P = int(pos_items.shape[0])
    D = int(user_W.shape[1])

    # Tile sizes: lane-aligned, shrunk for tiny inputs.  On v7x (2 TensorCores)
    # make sure the B axis splits into >= 2 "parallel" tiles whenever possible.
    b_min_pad = _round_up(B, 128)
    if b_min_pad >= 256:
        tb = min(tb, max(128, _round_up((B + 1) // 2, 128)))
    tb = min(tb, b_min_pad)
    tp = min(tp, _round_up(P, 128))
    b_pad = _round_up(B, tb)
    p_pad = _round_up(P, tp)
    nb = b_pad // tb
    npt = p_pad // tp

    # Embedding gathers stay in XLA (per-row DMA gather not worth it at small D),
    # but NOTHING is transposed: pos_e streams in its natural [P, D] layout and
    # user_e / item_e stay f32 (they never touch the MXU).
    # TODO(synk): for D >= ~128, move the item_W[pos_items] gather in-kernel
    # (scalar-prefetched ids + manual per-row DMA) to cut the XLA gather traffic.
    user_e = jnp.pad(user_W[users].astype(jnp.float32), ((0, b_pad - B), (0, 0)))
    item_e = jnp.pad(item_W[items].astype(jnp.float32), ((0, b_pad - B), (0, 0)))
    pos_e = jnp.pad(item_W[pos_items].astype(jnp.bfloat16), ((0, p_pad - P), (0, 0)))

    # Per-row bag boundaries and mean/(1-g) scale (O(B) work, no [B, P] matrix).
    starts = pos_item_offsets.astype(jnp.int32)                                   # [B]
    ends = jnp.concatenate([starts[1:], jnp.array([P], dtype=jnp.int32)])         # [B]
    lengths = ends - starts                                                       # [B]
    counts = jnp.maximum(lengths, 1).astype(jnp.float32)
    scale = (1.0 - float(g)) / counts                                             # [B]

    # Padded rows: start=0, length=0 (empty bag), scale=0 -> score 0 (sliced off).
    starts2 = jnp.pad(starts, (0, b_pad - B))[:, None]          # (B_pad, 1)
    lengths2 = jnp.pad(lengths, (0, b_pad - B))[:, None]
    scale2 = jnp.pad(scale, (0, b_pad - B))[:, None]

    # Per-B-tile [lo_blk, hi_blk] coverage over the P axis (in units of tp blocks),
    # scalar-prefetched into SMEM to drive tile skipping + DMA clamping.
    starts_t = jnp.pad(starts, (0, b_pad - B), constant_values=P).reshape(nb, tb)
    ends_t = jnp.pad(ends, (0, b_pad - B), constant_values=0).reshape(nb, tb)
    lo_blk = jnp.minimum(starts_t.min(axis=1) // tp, npt - 1)
    hi_blk = jnp.clip((ends_t.max(axis=1) + tp - 1) // tp - 1, lo_blk, npt - 1)
    tile_bounds = jnp.stack([lo_blk, hi_blk], axis=1).astype(jnp.int32)   # (nb, 2)

    kernel = functools.partial(sx_forward_kernel, g=float(g))

    out = pl.pallas_call(
        kernel,
        out_shape=jax.ShapeDtypeStruct((b_pad, 1), jnp.float32),
        grid_spec=pltpu.PrefetchScalarGridSpec(
            num_scalar_prefetch=1,                              # tile_bounds -> SMEM
            grid=(nb, npt),                                     # (B tiles, P tiles)
            in_specs=[
                pl.BlockSpec((tb, 1), lambda bi, pi, bnd: (bi, 0)),   # starts
                pl.BlockSpec((tb, 1), lambda bi, pi, bnd: (bi, 0)),   # lengths
                pl.BlockSpec((tb, 1), lambda bi, pi, bnd: (bi, 0)),   # scale
                pl.BlockSpec((tb, D), lambda bi, pi, bnd: (bi, 0)),   # user_e (f32, resident)
                pl.BlockSpec((tb, D), lambda bi, pi, bnd: (bi, 0)),   # item_e (f32, resident)
                # pos_e: streamed, natural layout; clamp to the intersecting block
                # range so skipped grid steps repeat the previous block (no re-DMA).
                pl.BlockSpec((tp, D),
                             lambda bi, pi, bnd: (jnp.clip(pi, bnd[bi, 0], bnd[bi, 1]), 0)),
            ],
            out_specs=pl.BlockSpec((tb, 1), lambda bi, pi, bnd: (bi, 0)),
            scratch_shapes=[pltpu.VMEM((tb, D), jnp.float32)],  # pooled-sum accumulator
        ),
        compiler_params=pltpu.CompilerParams(
            # B tiles shard across TensorCores (v7x megacore); P is the reduction.
            dimension_semantics=("parallel", "arbitrary"),
            # Budget leaves headroom for the (TB, TP) membership temporaries
            # (~a few MiB at tb=256/tp=512); safe on v7x's 64 MiB physical VMEM.
            vmem_limit_bytes=48 * 1024 * 1024,
        ),
    )(tile_bounds, starts2, lengths2, scale2, user_e, item_e, pos_e)

    return out[:B, 0]                                           # [B]


def xavier_uniform(key, num_rows, dim):
    # torch.nn.init.xavier_uniform_ on Embedding.weight [num, dim]:
    # fan_in = dim, fan_out = num, bound = sqrt(6 / (fan_in + fan_out))
    bound = (6.0 / (num_rows + dim)) ** 0.5
    return jax.random.uniform(key, (num_rows, dim), dtype=jnp.float32,
                              minval=-bound, maxval=bound)


if __name__ == "__main__":
    user_num, item_num, embed_dim = 16, 64, 32
    g = 0.5   # m, w only appear in calc_loss (not forward)

    root = jax.random.PRNGKey(0)
    k_uw, k_iw, k_case1, k_case2 = jax.random.split(root, 4)

    # Deterministic xavier-uniform parameter init (synthetic, no checkpoint).
    user_W = xavier_uniform(k_uw, user_num, embed_dim)
    item_W = xavier_uniform(k_iw, item_num, embed_dim)

    def reference(users, pos_items, offsets, items):
        # Pure-JAX f32 reference of SX.forward.
        P = int(pos_items.shape[0])
        user_e = user_W[users]
        pos_e = item_W[pos_items]
        item_e = item_W[items]
        ends = jnp.concatenate([offsets[1:], jnp.array([P], jnp.int32)])
        p_idx = jnp.arange(P, dtype=jnp.int32)[None, :]
        member = (p_idx >= offsets[:, None]) & (p_idx < ends[:, None])
        counts = jnp.maximum(member.sum(axis=1, keepdims=True), 1).astype(jnp.float32)
        mean_e = (member.astype(jnp.float32) @ pos_e) / counts
        u = g * user_e + (1.0 - g) * mean_e
        dot = jnp.sum(u * item_e, axis=1)
        return dot * jax.lax.rsqrt(
            jnp.maximum(jnp.sum(u * u, axis=1) * jnp.sum(item_e * item_e, axis=1),
                        jnp.float32(1e-16)))

    def run_case(key, B, min_bag, max_bag):
        k_u, k_len, k_p, k_i = jax.random.split(key, 4)
        users = jax.random.randint(k_u, (B,), 0, user_num, dtype=jnp.int32)
        lengths = jax.random.randint(k_len, (B,), min_bag, max_bag + 1, dtype=jnp.int32)
        lengths = lengths.at[0].set(max(max_bag, 1))         # guarantee P > 0
        offsets = jnp.concatenate(
            [jnp.zeros((1,), jnp.int32), jnp.cumsum(lengths)[:-1].astype(jnp.int32)])
        P = int(jnp.sum(lengths))
        pos_items = jax.random.randint(k_p, (P,), 0, item_num, dtype=jnp.int32)
        items = jax.random.randint(k_i, (B,), 0, item_num, dtype=jnp.int32)

        scores = sx_forward(user_W, item_W, users, pos_items, offsets, items, g)
        scores = jax.block_until_ready(scores)
        assert scores.shape == (B,)
        ref = reference(users, pos_items, offsets, items)
        err = float(jnp.max(jnp.abs(scores - ref)))
        assert err < 3e-2, f"max abs err {err}"

    # Case 1: small, module-consistent shapes (fixed bags of 3).
    run_case(k_case1, B=8, min_bag=3, max_bag=3)
    # Case 2: variable-length bags incl. empty ones; exercises multiple B tiles,
    # multiple P tiles, and the sorted-offset tile-skipping path.
    run_case(k_case2, B=200, min_bag=0, max_bag=7)

    # TODO(synk): dropout path (self.dropout) is inactive for dropout=None and is
    # not implemented; calc_loss / predict_* paths are outside forward().
    print("KERNEL_OK")
</pallas_src>

<mosaic_0001>
module attributes {stable_mosaic.version = 11 : i64} {
  func.func @sx_forward_kernel(%arg0: i32, %arg1: i32, %arg2: memref<1x2xi32, #tpu.memory_space<smem>>, %arg3: memref<128x1xi32, #tpu.memory_space<vmem>>, %arg4: memref<128x1xi32, #tpu.memory_space<vmem>>, %arg5: memref<128x1xf32, #tpu.memory_space<vmem>>, %arg6: memref<128x32xf32, #tpu.memory_space<vmem>>, %arg7: memref<128x32xf32, #tpu.memory_space<vmem>>, %arg8: memref<128x32xbf16, #tpu.memory_space<vmem>>, %arg9: memref<128x1xf32, #tpu.memory_space<vmem>>, %arg10: memref<128x32xf32, #tpu.memory_space<vmem>>) attributes {dimension_semantics = [#tpu.dimension_semantics<parallel>, #tpu.dimension_semantics<arbitrary>], iteration_bounds = array<i64: 1, 1>, scalar_prefetch = 1 : i64, scratch_operands = 1 : i64, tpu.core_type = #tpu.core_type<tc>, window_params = [{transform_indices = @transform_0, window_bounds = array<i64: 128, 1>}, {transform_indices = @transform_1, window_bounds = array<i64: 128, 1>}, {transform_indices = @transform_2, window_bounds = array<i64: 128, 1>}, {transform_indices = @transform_3, window_bounds = array<i64: 128, 32>}, {transform_indices = @transform_4, window_bounds = array<i64: 128, 32>}, {transform_indices = @transform_5, window_bounds = array<i64: 128, 32>}, {transform_indices = @transform_6, window_bounds = array<i64: 128, 1>}]} {
    %c0_i32 = arith.constant 0 : i32
    %0 = arith.cmpi eq, %arg1, %c0_i32 : i32
    %1 = arith.extui %0 : i1 to i32
    %c0_i32_0 = arith.constant 0 : i32
    %2 = arith.cmpi ne, %1, %c0_i32_0 : i32
    scf.if %2 {
      %cst = arith.constant 0.000000e+00 : f32
      %15 = vector.broadcast %cst : f32 to vector<128x32xf32>
      %c0_4 = arith.constant 0 : index
      %c0_5 = arith.constant 0 : index
      %16 = vector.load %arg10[%c0_4, %c0_5] : memref<128x32xf32, #tpu.memory_space<vmem>>, vector<128x32xf32>
      tpu.vector_store %arg10[%c0_4, %c0_5], %15 {strides = array<i32>} : memref<128x32xf32, #tpu.memory_space<vmem>>, vector<128x32xf32>,
    } else {
    }
    %3 = arith.index_cast %arg0 : i32 to index
    %c0 = arith.constant 0 : index
    %4 = memref.load %arg2[%3, %c0] : memref<1x2xi32, #tpu.memory_space<smem>>
    %5 = arith.index_cast %arg0 : i32 to index
    %c1 = arith.constant 1 : index
    %6 = memref.load %arg2[%5, %c1] : memref<1x2xi32, #tpu.memory_space<smem>>
    %7 = arith.cmpi sge, %arg1, %4 : i32
    %8 = arith.cmpi sle, %arg1, %6 : i32
    %9 = arith.andi %7, %8 : i1
    %10 = arith.extui %9 : i1 to i32
    %c0_i32_1 = arith.constant 0 : i32
    %11 = arith.cmpi ne, %10, %c0_i32_1 : i32
    scf.if %11 {
      %c0_4 = arith.constant 0 : index
      %c0_5 = arith.constant 0 : index
      %15 = vector.load %arg3[%c0_4, %c0_5] : memref<128x1xi32, #tpu.memory_space<vmem>>, vector<128x1xi32>
      %c128_i32 = arith.constant 128 : i32
      %16 = arith.muli %arg1, %c128_i32 : i32
      %17 = vector.broadcast %16 : i32 to vector<128x1xi32>
      %18 = arith.subi %15, %17 : vector<128x1xi32>
      %19 = tpu.iota {dimensions = array<i32: 1>} : vector<128x128xi32>
      %20 = vector.broadcast %18 : vector<128x1xi32> to vector<128x128xi32>
      %21 = arith.subi %19, %20 : vector<128x128xi32>
      %22 = tpu.bitcast %21 : vector<128x128xi32> -> vector<128x128xi32>
      %c0_6 = arith.constant 0 : index
      %c0_7 = arith.constant 0 : index
      %23 = vector.load %arg4[%c0_6, %c0_7] : memref<128x1xi32, #tpu.memory_space<vmem>>, vector<128x1xi32>
      %24 = tpu.bitcast %23 : vector<128x1xi32> -> vector<128x1xi32>
      %25 = vector.broadcast %24 : vector<128x1xi32> to vector<128x128xi32>
      %26 = arith.cmpi ult, %22, %25 : vector<128x128xi32>
      %27 = arith.extui %26 : vector<128x128xi1> to vector<128x128xi32>
      %28 = arith.sitofp %27 : vector<128x128xi32> to vector<128x128xf32>
      %29 = arith.truncf %28 : vector<128x128xf32> to vector<128x128xbf16>
      %c0_8 = arith.constant 0 : index
      %c0_9 = arith.constant 0 : index
      %30 = vector.load %arg10[%c0_8, %c0_9] : memref<128x32xf32, #tpu.memory_space<vmem>>, vector<128x32xf32>
      %c0_10 = arith.constant 0 : index
      %c0_11 = arith.constant 0 : index
      %31 = vector.load %arg8[%c0_10, %c0_11] : memref<128x32xbf16, #tpu.memory_space<vmem>>, vector<128x32xbf16>
      %cst = arith.constant dense<0.000000e+00> : vector<128x32xf32>
      %32 = tpu.matmul %29, %31, %cst {dimension_numbers = #tpu.dot_dimension_numbers<[1], [0], [0], [1], [0, 0, 1, 1], [], []>} : vector<128x128xbf16>, vector<128x32xbf16>, vector<128x32xf32> -> vector<128x32xf32>
      %33 = arith.addf %30, %32 : vector<128x32xf32>
      %c0_12 = arith.constant 0 : index
      %c0_13 = arith.constant 0 : index
      %34 = vector.load %arg10[%c0_12, %c0_13] : memref<128x32xf32, #tpu.memory_space<vmem>>, vector<128x32xf32>
      tpu.vector_store %arg10[%c0_12, %c0_13], %33 {strides = array<i32>} : memref<128x32xf32, #tpu.memory_space<vmem>>, vector<128x32xf32>,
    } else {
    }
    %c0_i32_2 = arith.constant 0 : i32
    %12 = arith.cmpi eq, %arg1, %c0_i32_2 : i32
    %13 = arith.extui %12 : i1 to i32
    %c0_i32_3 = arith.constant 0 : i32
    %14 = arith.cmpi ne, %13, %c0_i32_3 : i32
    scf.if %14 {
      %c0_4 = arith.constant 0 : index
      %c0_5 = arith.constant 0 : index
      %15 = vector.load %arg10[%c0_4, %c0_5] : memref<128x32xf32, #tpu.memory_space<vmem>>, vector<128x32xf32>
      %c0_6 = arith.constant 0 : index
      %c0_7 = arith.constant 0 : index
      %16 = vector.load %arg5[%c0_6, %c0_7] : memref<128x1xf32, #tpu.memory_space<vmem>>, vector<128x1xf32>
      %17 = vector.broadcast %16 : vector<128x1xf32> to vector<128x32xf32>
      %18 = arith.mulf %15, %17 : vector<128x32xf32>
      %c0_8 = arith.constant 0 : index
      %c0_9 = arith.constant 0 : index
      %19 = vector.load %arg6[%c0_8, %c0_9] : memref<128x32xf32, #tpu.memory_space<vmem>>, vector<128x32xf32>
      %cst = arith.constant 5.000000e-01 : f32
      %20 = vector.broadcast %cst : f32 to vector<128x32xf32>
      %21 = arith.mulf %20, %19 : vector<128x32xf32>
      %22 = arith.addf %21, %18 : vector<128x32xf32>
      %c0_10 = arith.constant 0 : index
      %c0_11 = arith.constant 0 : index
      %23 = vector.load %arg7[%c0_10, %c0_11] : memref<128x32xf32, #tpu.memory_space<vmem>>, vector<128x32xf32>
      %24 = arith.mulf %22, %23 : vector<128x32xf32>
      %cst_12 = arith.constant dense<0.000000e+00> : vector<128xf32>
      %25 = vector.multi_reduction <add>, %24, %cst_12 [1] : vector<128x32xf32> to vector<128xf32>
      %26 = vector.shape_cast %25 : vector<128xf32> to vector<128x1xf32>
      %27 = arith.mulf %22, %22 : vector<128x32xf32>
      %cst_13 = arith.constant dense<0.000000e+00> : vector<128xf32>
      %28 = vector.multi_reduction <add>, %27, %cst_13 [1] : vector<128x32xf32> to vector<128xf32>
      %29 = vector.shape_cast %28 : vector<128xf32> to vector<128x1xf32>
      %30 = arith.mulf %23, %23 : vector<128x32xf32>
      %cst_14 = arith.constant dense<0.000000e+00> : vector<128xf32>
      %31 = vector.multi_reduction <add>, %30, %cst_14 [1] : vector<128x32xf32> to vector<128xf32>
      %32 = vector.shape_cast %31 : vector<128xf32> to vector<128x1xf32>
      %33 = arith.mulf %29, %32 : vector<128x1xf32>
      %cst_15 = arith.constant 9.99999993E-9 : f32
      %cst_16 = arith.constant 9.99999993E-9 : f32
      %34 = arith.mulf %cst_15, %cst_16 : f32
      %35 = vector.broadcast %34 : f32 to vector<128x1xf32>
      %36 = arith.maximumf %33, %35 : vector<128x1xf32>
      %37 = math.rsqrt %36 : vector<128x1xf32>
      %38 = arith.mulf %26, %37 : vector<128x1xf32>
      %c0_17 = arith.constant 0 : index
      %c0_18 = arith.constant 0 : index
      %39 = vector.load %arg9[%c0_17, %c0_18] : memref<128x1xf32, #tpu.memory_space<vmem>>, vector<128x1xf32>
      tpu.vector_store %arg9[%c0_17, %c0_18], %38 {strides = array<i32>} : memref<128x1xf32, #tpu.memory_space<vmem>>, vector<128x1xf32>,
    } else {
    }
    return
  }
  func.func @transform_0(%arg0: i32, %arg1: i32, %arg2: memref<1x2xi32, #tpu.memory_space<smem>>) -> (i32, i32) {
    %c0_i32 = arith.constant 0 : i32
    %c0_i32_0 = arith.constant 0 : i32
    return %arg0, %c0_i32 : i32, i32
  }
  func.func @transform_1(%arg0: i32, %arg1: i32, %arg2: memref<1x2xi32, #tpu.memory_space<smem>>) -> (i32, i32) {
    %c0_i32 = arith.constant 0 : i32
    %c0_i32_0 = arith.constant 0 : i32
    return %arg0, %c0_i32 : i32, i32
  }
  func.func @transform_2(%arg0: i32, %arg1: i32, %arg2: memref<1x2xi32, #tpu.memory_space<smem>>) -> (i32, i32) {
    %c0_i32 = arith.constant 0 : i32
    %c0_i32_0 = arith.constant 0 : i32
    return %arg0, %c0_i32 : i32, i32
  }
  func.func @transform_3(%arg0: i32, %arg1: i32, %arg2: memref<1x2xi32, #tpu.memory_space<smem>>) -> (i32, i32) {
    %c0_i32 = arith.constant 0 : i32
    %c0_i32_0 = arith.constant 0 : i32
    return %arg0, %c0_i32 : i32, i32
  }
  func.func @transform_4(%arg0: i32, %arg1: i32, %arg2: memref<1x2xi32, #tpu.memory_space<smem>>) -> (i32, i32) {
    %c0_i32 = arith.constant 0 : i32
    %c0_i32_0 = arith.constant 0 : i32
    return %arg0, %c0_i32 : i32, i32
  }
  func.func @transform_5(%arg0: i32, %arg1: i32, %arg2: memref<1x2xi32, #tpu.memory_space<smem>>) -> (i32, i32) {
    %0 = arith.index_cast %arg0 : i32 to index
    %c0 = arith.constant 0 : index
    %1 = memref.load %arg2[%0, %c0] : memref<1x2xi32, #tpu.memory_space<smem>>
    %2 = arith.index_cast %arg0 : i32 to index
    %c1 = arith.constant 1 : index
    %3 = memref.load %arg2[%2, %c1] : memref<1x2xi32, #tpu.memory_space<smem>>
    %4 = arith.maxsi %1, %arg1 : i32
    %5 = arith.minsi %3, %4 : i32
    %c0_i32 = arith.constant 0 : i32
    %c0_i32_0 = arith.constant 0 : i32
    return %5, %c0_i32 : i32, i32
  }
  func.func @transform_6(%arg0: i32, %arg1: i32, %arg2: memref<1x2xi32, #tpu.memory_space<smem>>) -> (i32, i32) {
    %c0_i32 = arith.constant 0 : i32
    %c0_i32_0 = arith.constant 0 : i32
    return %arg0, %c0_i32 : i32, i32
  }
}

</mosaic_0001>

<bundles_post_ra>
// kernel: tpu_custom_call.1
= control target key start
LH: loop header
LB: loop body
LE: loop exit
PB: predicated region body
PF: predicated region fallthrough
CT: control target
= control target key end

     0   :  { %s1800_s0 = inlined_call_operand.vmem [shape: s32[1,2], index: 0, kind: input, shape index: {}]   ;;  %s1801_s1 = inlined_call_operand.vmem [shape: s32[128,1], index: 1, kind: input, shape index: {}]   ;;  %s1802_s2 = inlined_call_operand.vmem [shape: s32[128,1], index: 2, kind: input, shape index: {}]   ;;  %s1803_s3 = inlined_call_operand.vmem [shape: f32[128,1], index: 3, kind: input, shape index: {}]   ;;  %s1804_s4 = inlined_call_operand.vmem [shape: f32[128,32], index: 4, kind: input, shape index: {}]   ;;  %s1805_s5 = inlined_call_operand.vmem [shape: f32[128,32], index: 5, kind: input, shape index: {}]   ;;  %s1806_s6 = inlined_call_operand.vmem [shape: bf16[128,32], index: 6, kind: input, shape index: {}]   ;;  %s1807_s7 = inlined_call_operand.vmem [shape: f32[128,1], index: 7, kind: output, shape index: {}]  }
   0x1   :  { %s12_s26 = sshll.u32 %s1800_s0, 4  ;;  %s13_s26 = int_to_ptr.vmem [resolvable:$true] %s12_s26 }
   0x2   :  { %s1187_s27 = scalar_lea.vmem %s13_s26, 16  ;;  %p1192_p1 = scmp.lt.s32.totalorder %s13_s26, %s13_s26 }
   0x3   :  { %p1188_p0 = scmp.ne.s32.totalorder %s13_s26, %s1187_s27  ;;  %p1193_p2 = scmp.lt.s32.totalorder %s1187_s27, %s1187_s27 }
   0x5   :  { %p1194_p3 = por %p1193_p2, %p1192_p1 }
   0x7   :  { %p1195_p4 = pnand %p1194_p3, %p1188_p0 }
   0x9   :  { %1198 = shalt.err (!%p1195_p4)  }
   0xa   :  { %s1201_s28 = smov [#allocation4]  }
   0xb   :  { %15 = dma.vmem_to_smem %s13_s26, 16, %s1201_s28, [#allocation3] }
   0xc   :  { %1199 = dma.done.wait [#allocation3], 16 }
   0xd   :  { %1200 = vsyncadd [#allocation3], 4294967280 }
   0xe   :  { %17 = sfence }
   0xf   :  { %s66_s29 = sld [smem:[#allocation4]]  ;;  %vm92_vm0 = vcmask 261120   ;;  %s1028_s30 = sld [smem:[#allocation4 + $0x1]]  ;;  %v1202_v0 = vmov 0.0  }
  0x10   :  { %93 = vst.msk [vmem:[#allocation2] sm:$0xff] %vm92_vm0, %v1202_v0  ;;  %94 = vst.msk [vmem:[#allocation2 + $0x8] sm:$0xff] %vm92_vm0, %v1202_v0 }
  0x11   :  { %95 = vst.msk [vmem:[#allocation2 + $0x10] sm:$0xff] %vm92_vm0, %v1202_v0  ;;  %96 = vst.msk [vmem:[#allocation2 + $0x18] sm:$0xff] %vm92_vm0, %v1202_v0 }
  0x12   :  { %97 = vst.msk [vmem:[#allocation2 + $0x20] sm:$0xff] %vm92_vm0, %v1202_v0  ;;  %98 = vst.msk [vmem:[#allocation2 + $0x28] sm:$0xff] %vm92_vm0, %v1202_v0 }
  0x13   :  { %99 = vst.msk [vmem:[#allocation2 + $0x30] sm:$0xff] %vm92_vm0, %v1202_v0  ;;  %100 = vst.msk [vmem:[#allocation2 + $0x38] sm:$0xff] %vm92_vm0, %v1202_v0 }
  0x14   :  { %101 = vst.msk [vmem:[#allocation2 + $0x40] sm:$0xff] %vm92_vm0, %v1202_v0  ;;  %102 = vst.msk [vmem:[#allocation2 + $0x48] sm:$0xff] %vm92_vm0, %v1202_v0 }
  0x15   :  { %103 = vst.msk [vmem:[#allocation2 + $0x50] sm:$0xff] %vm92_vm0, %v1202_v0  ;;  %104 = vst.msk [vmem:[#allocation2 + $0x58] sm:$0xff] %vm92_vm0, %v1202_v0  ;;  %p69_p5 = scmp.gt.s32.totalorder %s66_s29, 0  ;;  %p1032_p6 = scmp.le.s32.totalorder %s66_s29, 0 }
  0x16   :  { %105 = vst.msk [vmem:[#allocation2 + $0x60] sm:$0xff] %vm92_vm0, %v1202_v0  ;;  %106 = vst.msk [vmem:[#allocation2 + $0x68] sm:$0xff] %vm92_vm0, %v1202_v0  ;;  %p1033_p7 = scmp.ge.s32.totalorder %s1028_s30, 0 }
  0x17   :  { %107 = vst.msk [vmem:[#allocation2 + $0x70] sm:$0xff] %vm92_vm0, %v1202_v0  ;;  %108 = vst.msk [vmem:[#allocation2 + $0x78] sm:$0xff] %vm92_vm0, %v1202_v0  ;;  %s1809_s29 = smov (!%p69_p5, %s66_s29), 0 }
  0x18   :  { %p115_p8 = pnand %p1033_p7, %p1032_p6  ;;  %p71_p9 = scmp.lt.s32.totalorder %s1028_s30, %s1809_s29 }
  0x19   :  { %v127_v1 = vld [vmem:[%s1801_s1 + $0x40] sm:$0xff] (!%p115_p8)  ;;  %v1203_v3 = vmov (!%p115_p8), 0   ;;  %v128_v4 = vld [vmem:[%s1801_s1 + $0x48] sm:$0xff] (!%p115_p8)  ;;  %v122_v6 = vld [vmem:[%s1801_s1 + $0x18] sm:$0xff] (!%p115_p8)  ;;  %v153_v46 = vlaneseq (!%p115_p8)  ;;  %v1204_v58 = vmov (!%p115_p8), 1.0|1.0  }
  0x1a   :  { %s1811_s30 = smov (!%p71_p9, %s1028_s30), %s1809_s29  ;;  %118 = sbr.rel (%p115_p8) target bundleno = 436 (0x1b4), region = 33 }
  0x1b   :  { %s1029_s0 = sshll.u32 %s1811_s30, 4  ;;  %v119_v2 = vld [vmem:[%s1801_s1] sm:$0xff] (!%p115_p8)  ;;  %1144 = vset.pattern.permute.xlu1 (!%p115_p8), %v1203_v3  ;;  %1143 = vset.pattern.permute.xlu0 (!%p115_p8), %v1203_v3  ;;  %v120_v5 = vld [vmem:[%s1801_s1 + $0x8] sm:$0xff] (!%p115_p8)  ;;  %v121_v7 = vld [vmem:[%s1801_s1 + $0x10] sm:$0xff] (!%p115_p8)  ;;  %v1374_v49 = vand.u32 (!%p115_p8), 127, %v153_v46 }
  0x1c   :  { %p74_p10 = scmp.lt.s32.totalorder %s1029_s0, 15  ;;  %180 = vperm.xlu1 (!%p115_p8), %1144, %v127_v1   ;;  %156 = vperm.xlu0 (!%p115_p8), %1143, %v119_v2   ;;  %v130_v8 = vld [vmem:[%s1801_s1 + $0x58] sm:$0xff] (!%p115_p8)  ;;  %v129_v9 = vld [vmem:[%s1801_s1 + $0x50] sm:$0xff] (!%p115_p8)  ;;  %v220_v12 = vld [vmem:[%s1802_s2 + $0x8] sm:$0xff] (!%p115_p8) }
  0x1d   :  { %v219_v13 = vld [vmem:[%s1802_s2] sm:$0xff] (!%p115_p8)  ;;  %v228_v15 = vld [vmem:[%s1802_s2 + $0x48] sm:$0xff] (!%p115_p8)  ;;  %v222_v18 = vld [vmem:[%s1802_s2 + $0x18] sm:$0xff] (!%p115_p8) }
  0x1e   :  { %s1813_s0 = smov (!%p74_p10, %s1029_s0), 15  ;;  %v227_v16 = vld [vmem:[%s1802_s2 + $0x40] sm:$0xff] (!%p115_p8)  ;;  %v221_v19 = vld [vmem:[%s1802_s2 + $0x10] sm:$0xff] (!%p115_p8)  ;;  %v230_v21 = vld [vmem:[%s1802_s2 + $0x58] sm:$0xff] (!%p115_p8) }
  0x1f   :  { %s1030_s8 = sshll.u32 %s1813_s0, 2  ;;  %v229_v22 = vld [vmem:[%s1802_s2 + $0x50] sm:$0xff] (!%p115_p8)  ;;  %v124_v24 = vld [vmem:[%s1801_s1 + $0x28] sm:$0xff] (!%p115_p8)  ;;  %v123_v25 = vld [vmem:[%s1801_s1 + $0x20] sm:$0xff] (!%p115_p8) }
  0x20   :  { %s1268_s11 = scalar_lea.vmem %s1806_s6, %s1030_s8  ;;  %183 = vperm.xlu1 (!%p115_p8), %1144, %v128_v4   ;;  %159 = vperm.xlu0 (!%p115_p8), %1143, %v120_v5   ;;  %v132_v27 = vld [vmem:[%s1801_s1 + $0x68] sm:$0xff] (!%p115_p8)  ;;  %v131_v28 = vld [vmem:[%s1801_s1 + $0x60] sm:$0xff] (!%p115_p8)  ;;  %v126_v30 = vld [vmem:[%s1801_s1 + $0x38] sm:$0xff] (!%p115_p8) }
  0x21   :  { %v1145_v10 = vld [vmem:[%s1268_s11] sm:$0xff]   ;;  %v1146_v11 = vld [vmem:[%s1268_s11 + $0x8] sm:$0xff]   ;;  %v1147_v14 = vld [vmem:[%s1268_s11 + $0x10] sm:$0xff]  }
  0x22   :  { %1090 = vmatprep.subr.bf16.mxu0 %v1145_v10  ;;  %1122 = vmatprep.subr.bf16.mxu1 %v1145_v10  ;;  %v1148_v17 = vld [vmem:[%s1268_s11 + $0x18] sm:$0xff]   ;;  %v1149_v20 = vld [vmem:[%s1268_s11 + $0x20] sm:$0xff]   ;;  %v1150_v23 = vld [vmem:[%s1268_s11 + $0x28] sm:$0xff]  }
  0x23   :  { %1091 = vmatpush3.bf16.msra.mxu0 %v1145_v10  ;;  %1130 = vmatpush3.bf16.msra.mxu1 %v1145_v10  ;;  %v1151_v26 = vld [vmem:[%s1268_s11 + $0x30] sm:$0xff]   ;;  %v1152_v29 = vld [vmem:[%s1268_s11 + $0x38] sm:$0xff]   ;;  %v224_v34 = vld [vmem:[%s1802_s2 + $0x28] sm:$0xff] }
  0x24   :  { %165 = vperm.xlu1 %1144, %v122_v6   ;;  %162 = vperm.xlu0 %1143, %v121_v7   ;;  %v125_v31 = vld [vmem:[%s1801_s1 + $0x30] sm:$0xff]  ;;  %v134_v32 = vld [vmem:[%s1801_s1 + $0x78] sm:$0xff]  ;;  %v223_v35 = vld [vmem:[%s1802_s2 + $0x20] sm:$0xff] }
  0x25   :  { %1092 = vmatprep.subr.bf16.mxu0 %v1146_v11  ;;  %1123 = vmatprep.subr.bf16.mxu1 %v1146_v11  ;;  %v133_v33 = vld [vmem:[%s1801_s1 + $0x70] sm:$0xff]  ;;  %v232_v36 = vld [vmem:[%s1802_s2 + $0x68] sm:$0xff]  ;;  %v231_v37 = vld [vmem:[%s1802_s2 + $0x60] sm:$0xff] }
  0x26   :  { %v226_v38 = vld [vmem:[%s1802_s2 + $0x38] sm:$0xff]  ;;  %v225_v39 = vld [vmem:[%s1802_s2 + $0x30] sm:$0xff] }
  0x27   :  { %1093 = vmatpush3.bf16.msra.mxu0 %v1146_v11  ;;  %1131 = vmatpush3.bf16.msra.mxu1 %v1146_v11  ;;  %v234_v40 = vld [vmem:[%s1802_s2 + $0x78] sm:$0xff]  ;;  %v233_v41 = vld [vmem:[%s1802_s2 + $0x70] sm:$0xff] }
  0x28   :  { %189 = vperm.xlu1 %1144, %v130_v8   ;;  %186 = vperm.xlu0 %1143, %v129_v9  }
  0x29   :  { %1094 = vmatprep.subr.bf16.mxu0 %v1147_v14  ;;  %1124 = vmatprep.subr.bf16.mxu1 %v1147_v14 }
  0x2b   :  { %1095 = vmatpush3.bf16.msra.mxu0 %v1147_v14  ;;  %1132 = vmatpush3.bf16.msra.mxu1 %v1147_v14 }
  0x2c   :  { %239 = vperm.xlu1 %1144, %v220_v12   ;;  %236 = vperm.xlu0 %1143, %v219_v13  }
  0x2d   :  { %1096 = vmatprep.subr.bf16.mxu0 %v1148_v17  ;;  %1125 = vmatprep.subr.bf16.mxu1 %v1148_v17 }
  0x2f   :  { %1097 = vmatpush3.bf16.msra.mxu0 %v1148_v17  ;;  %1133 = vmatpush3.bf16.msra.mxu1 %v1148_v17 }
  0x30   :  { %263 = vperm.xlu1 %1144, %v228_v15   ;;  %260 = vperm.xlu0 %1143, %v227_v16  }
  0x31   :  { %1098 = vmatprep.subr.bf16.mxu0 %v1149_v20  ;;  %1126 = vmatprep.subr.bf16.mxu1 %v1149_v20 }
  0x33   :  { %1099 = vmatpush3.bf16.msra.mxu0 %v1149_v20  ;;  %1134 = vmatpush3.bf16.msra.mxu1 %v1149_v20 }
  0x34   :  { %245 = vperm.xlu1 %1144, %v222_v18   ;;  %242 = vperm.xlu0 %1143, %v221_v19  }
  0x35   :  { %1100 = vmatprep.subr.bf16.mxu0 %v1150_v23  ;;  %1127 = vmatprep.subr.bf16.mxu1 %v1150_v23 }
  0x37   :  { %1101 = vmatpush3.bf16.msra.mxu0 %v1150_v23  ;;  %1135 = vmatpush3.bf16.msra.mxu1 %v1150_v23 }
  0x38   :  { %269 = vperm.xlu1 %1144, %v230_v21   ;;  %266 = vperm.xlu0 %1143, %v229_v22  }
  0x39   :  { %1102 = vmatprep.subr.bf16.mxu0 %v1151_v26  ;;  %1128 = vmatprep.subr.bf16.mxu1 %v1151_v26 }
  0x3b   :  { %1103 = vmatpush3.bf16.msra.mxu0 %v1151_v26  ;;  %1136 = vmatpush3.bf16.msra.mxu1 %v1151_v26 }
  0x3c   :  { %171 = vperm.xlu1 %1144, %v124_v24   ;;  %168 = vperm.xlu0 %1143, %v123_v25  }
  0x3d   :  { %1104 = vmatprep.subr.bf16.mxu0 %v1152_v29  ;;  %1129 = vmatprep.subr.bf16.mxu1 %v1152_v29 }
  0x3f   :  { %1105 = vmatpush3.bf16.msra.mxu0 %v1152_v29  ;;  %1137 = vmatpush3.bf16.msra.mxu1 %v1152_v29  ;;  %v341_v29 = vld [vmem:[#allocation2 + $0x10] sm:$0xff] }
  0x40   :  { %195 = vperm.xlu1 %1144, %v132_v27   ;;  %192 = vperm.xlu0 %1143, %v131_v28  }
  0x44   :  { %177 = vperm.xlu1 %1144, %v126_v30   ;;  %174 = vperm.xlu0 %1143, %v125_v31   ;;  %v339_v30 = vld [vmem:[#allocation2] sm:$0xff] }
  0x48   :  { %201 = vperm.xlu1 %1144, %v134_v32   ;;  %198 = vperm.xlu0 %1143, %v133_v33   ;;  %v342_v32 = vld [vmem:[#allocation2 + $0x18] sm:$0xff] }
  0x4c   :  { %251 = vperm.xlu1 %1144, %v224_v34   ;;  %248 = vperm.xlu0 %1143, %v223_v35   ;;  %v340_v35 = vld [vmem:[#allocation2 + $0x8] sm:$0xff] }
  0x50   :  { %275 = vperm.xlu1 %1144, %v232_v36   ;;  %272 = vperm.xlu0 %1143, %v231_v37  }
  0x54   :  { %257 = vperm.xlu1 %1144, %v226_v38   ;;  %254 = vperm.xlu0 %1143, %v225_v39   ;;  %v349_v38 = vld [vmem:[#allocation2 + $0x50] sm:$0xff] }
  0x58   :  { %281 = vperm.xlu1 %1144, %v234_v40   ;;  %278 = vperm.xlu0 %1143, %v233_v41   ;;  %v347_v41 = vld [vmem:[#allocation2 + $0x40] sm:$0xff] }
  0x9b   :  { %v181_v42 = vpop.permute.xlu1 %180  ;;  %v157_v43 = vpop.permute.xlu0 %156 }
  0x9c   :  { %v203_v52 = vsub.s32 %v1374_v49, %v157_v43  ;;  %v211_v56 = vsub.s32 %v1374_v49, %v181_v42 }
  0x9f   :  { %v184_v44 = vpop.permute.xlu1 %183  ;;  %v160_v45 = vpop.permute.xlu0 %159 }
  0xa0   :  { %v204_v53 = vsub.s32 %v1374_v49, %v160_v45  ;;  %v212_v57 = vsub.s32 %v1374_v49, %v184_v44  ;;  %v350_v44 = vld [vmem:[#allocation2 + $0x58] sm:$0xff] }
  0xa3   :  { %v166_v47 = vpop.permute.xlu1 %165  ;;  %v163_v48 = vpop.permute.xlu0 %162 }
  0xa4   :  { %v206_v61 = vsub.s32 %v1374_v49, %v166_v47  ;;  %v205_v62 = vsub.s32 %v1374_v49, %v163_v48  ;;  %v348_v47 = vld [vmem:[#allocation2 + $0x48] sm:$0xff] }
  0xa7   :  { %v190_v50 = vpop.permute.xlu1 %189  ;;  %v187_v51 = vpop.permute.xlu0 %186 }
  0xa8   :  { %v214_v1 = vsub.s32 %v1374_v49, %v190_v50  ;;  %v213_v2 = vsub.s32 %v1374_v49, %v187_v51 }
  0xab   :  { %v240_v54 = vpop.permute.xlu1 %239  ;;  %v237_v55 = vpop.permute.xlu0 %236 }
  0xac   :  { %vm284_vm1 = vcmp.lt.u32.totalorder %v204_v53, %v240_v54  ;;  %vm283_vm2 = vcmp.lt.u32.totalorder %v203_v52, %v237_v55  ;;  %v345_v53 = vld [vmem:[#allocation2 + $0x30] sm:$0xff]  ;;  %v343_v54 = vld [vmem:[#allocation2 + $0x20] sm:$0xff] }
  0xad   :  { %vm1058_vm3 = vmpackc.low %vm284_vm1, %vm283_vm2 }
  0xae   :  { %1106 = vmatprep.mubr.msk.bf16.mxu0 %vm1058_vm3, %v1204_v58 }
  0xaf   :  { %v264_v59 = vpop.permute.xlu1 %263  ;;  %v261_v60 = vpop.permute.xlu0 %260 }
  0xb0   :  { %vm292_vm4 = vcmp.lt.u32.totalorder %v212_v57, %v264_v59  ;;  %vm291_vm5 = vcmp.lt.u32.totalorder %v211_v56, %v261_v60  ;;  %v346_v56 = vld [vmem:[#allocation2 + $0x38] sm:$0xff]  ;;  %v344_v59 = vld [vmem:[#allocation2 + $0x28] sm:$0xff] }
  0xb1   :  { %vm1066_vm6 = vmpackc.low %vm292_vm4, %vm291_vm5 }
  0xb2   :  { %1114 = vmatprep.mubr.msk.bf16.mxu1 %vm1066_vm6, %v1204_v58 }
  0xb3   :  { %v246_v63 = vpop.permute.xlu1 %245  ;;  %v243_v0 = vpop.permute.xlu0 %242 }
  0xb4   :  { %vm286_vm7 = vcmp.lt.u32.totalorder %v206_v61, %v246_v63  ;;  %vm285_vm8 = vcmp.lt.u32.totalorder %v205_v62, %v243_v0  ;;  %v353_v62 = vld [vmem:[#allocation2 + $0x70] sm:$0xff] }
  0xb5   :  { %vm1060_vm9 = vmpackc.low %vm286_vm7, %vm285_vm8 }
  0xb6   :  { %1107 = vmatmul.mubr.msk.bf16.vlgmr.msra.gmra.mrb[0].mxu0 %vm1060_vm9, %v1204_v58 }
  0xb7   :  { %v270_v3 = vpop.permute.xlu1 %269  ;;  %v267_v4 = vpop.permute.xlu0 %266 }
  0xb8   :  { %vm294_vm10 = vcmp.lt.u32.totalorder %v214_v1, %v270_v3  ;;  %vm293_vm11 = vcmp.lt.u32.totalorder %v213_v2, %v267_v4  ;;  %v351_v1 = vld [vmem:[#allocation2 + $0x60] sm:$0xff]  ;;  %v354_v4 = vld [vmem:[#allocation2 + $0x78] sm:$0xff] }
  0xb9   :  { %vm1068_vm12 = vmpackc.low %vm294_vm10, %vm293_vm11 }
  0xba   :  { %1115 = vmatmul.mubr.msk.bf16.vlgmr.msra.gmra.mrb[0].mxu1 %vm1068_vm12, %v1204_v58 }
  0xbb   :  { %v172_v5 = vpop.permute.xlu1 %171  ;;  %v169_v6 = vpop.permute.xlu0 %168 }
  0xbc   :  { %v208_v13 = vsub.s32 %v1374_v49, %v172_v5  ;;  %v207_v14 = vsub.s32 %v1374_v49, %v169_v6 }
  0xbf   :  { %v196_v7 = vpop.permute.xlu1 %195  ;;  %v193_v8 = vpop.permute.xlu0 %192 }
  0xc0   :  { %v216_v17 = vsub.s32 %v1374_v49, %v196_v7  ;;  %v215_v18 = vsub.s32 %v1374_v49, %v193_v8  ;;  %v352_v7 = vld [vmem:[#allocation2 + $0x68] sm:$0xff] }
  0xc3   :  { %v178_v9 = vpop.permute.xlu1 %177  ;;  %v175_v10 = vpop.permute.xlu0 %174 }
  0xc4   :  { %v210_v21 = vsub.s32 %v1374_v49, %v178_v9  ;;  %v209_v22 = vsub.s32 %v1374_v49, %v175_v10 }
  0xc7   :  { %v202_v11 = vpop.permute.xlu1 %201  ;;  %v199_v12 = vpop.permute.xlu0 %198 }
  0xc8   :  { %v218_v25 = vsub.s32 %v1374_v49, %v202_v11  ;;  %v217_v26 = vsub.s32 %v1374_v49, %v199_v12 }
  0xcb   :  { %v252_v15 = vpop.permute.xlu1 %251  ;;  %v249_v16 = vpop.permute.xlu0 %248 }
  0xcc   :  { %vm288_vm13 = vcmp.lt.u32.totalorder %v208_v13, %v252_v15  ;;  %vm287_vm14 = vcmp.lt.u32.totalorder %v207_v14, %v249_v16 }
  0xcd   :  { %vm1062_vm15 = vmpackc.low %vm288_vm13, %vm287_vm14 }
  0xce   :  { %1110 = vmatprep.mubr.msk.bf16.mxu0 %vm1062_vm15, %v1204_v58 }
  0xcf   :  { %v276_v19 = vpop.permute.xlu1 %275  ;;  %v273_v20 = vpop.permute.xlu0 %272 }
  0xd0   :  { %vm296_vm1 = vcmp.lt.u32.totalorder %v216_v17, %v276_v19  ;;  %vm295_vm2 = vcmp.lt.u32.totalorder %v215_v18, %v273_v20 }
  0xd1   :  { %vm1070_vm3 = vmpackc.low %vm296_vm1, %vm295_vm2 }
  0xd2   :  { %1118 = vmatprep.mubr.msk.bf16.mxu1 %vm1070_vm3, %v1204_v58 }
  0xd3   :  { %v258_v23 = vpop.permute.xlu1 %257  ;;  %v255_v24 = vpop.permute.xlu0 %254 }
  0xd4   :  { %vm290_vm4 = vcmp.lt.u32.totalorder %v210_v21, %v258_v23  ;;  %vm289_vm5 = vcmp.lt.u32.totalorder %v209_v22, %v255_v24 }
  0xd5   :  { %vm1064_vm6 = vmpackc.low %vm290_vm4, %vm289_vm5 }
  0xd6   :  { %1111 = vmatmul.mubr.msk.bf16.gmra.mrb[4].mxu0 %vm1064_vm6, %v1204_v58 }
  0xd7   :  { %v282_v27 = vpop.permute.xlu1 %281  ;;  %v279_v28 = vpop.permute.xlu0 %278 }
  0xd8   :  { %vm298_vm7 = vcmp.lt.u32.totalorder %v218_v25, %v282_v27  ;;  %vm297_vm8 = vcmp.lt.u32.totalorder %v217_v26, %v279_v28 }
  0xd9   :  { %vm1072_vm9 = vmpackc.low %vm298_vm7, %vm297_vm8 }
  0xda   :  { %1119 = vmatmul.mubr.msk.bf16.gmra.mrb[4].mxu1 %vm1072_vm9, %v1204_v58 }
 0x189   :  { %v1108_v31 = vpop.f32.mrb[0].mxu0 }
 0x18a   :  { %v518_v33 = vadd.f32 %v1108_v31, %v341_v29  ;;  %v453_v34 = vpop.f32.mrb[1].mxu0 }
 0x18b   :  { %v516_v36 = vadd.f32 %v453_v34, %v339_v30  ;;  %v1109_v37 = vpop.f32.mrb[2].mxu0 }
 0x18c   :  { %535 = vst.msk [vmem:[#allocation2 + $0x10] sm:$0xff] %vm92_vm0, %v518_v33  ;;  %v519_v39 = vadd.f32 %v1109_v37, %v342_v32  ;;  %v456_v40 = vpop.f32.mrb[3].mxu0 }
 0x18d   :  { %533 = vst.msk [vmem:[#allocation2] sm:$0xff] %vm92_vm0, %v516_v36  ;;  %v517_v42 = vadd.f32 %v456_v40, %v340_v35  ;;  %v1116_v43 = vpop.f32.mrb[0].mxu1 }
 0x18e   :  { %536 = vst.msk [vmem:[#allocation2 + $0x18] sm:$0xff] %vm92_vm0, %v519_v39  ;;  %v526_v45 = vadd.f32 %v1116_v43, %v349_v38  ;;  %v485_v46 = vpop.f32.mrb[1].mxu1 }
 0x18f   :  { %534 = vst.msk [vmem:[#allocation2 + $0x8] sm:$0xff] %vm92_vm0, %v517_v42  ;;  %v524_v48 = vadd.f32 %v485_v46, %v347_v41  ;;  %v1117_v49 = vpop.f32.mrb[2].mxu1 }
 0x190   :  { %543 = vst.msk [vmem:[#allocation2 + $0x50] sm:$0xff] %vm92_vm0, %v526_v45  ;;  %v527_v50 = vadd.f32 %v1117_v49, %v350_v44  ;;  %v488_v51 = vpop.f32.mrb[3].mxu1 }
 0x191   :  { %541 = vst.msk [vmem:[#allocation2 + $0x40] sm:$0xff] %vm92_vm0, %v524_v48  ;;  %v525_v52 = vadd.f32 %v488_v51, %v348_v47 }
 0x192   :  { %544 = vst.msk [vmem:[#allocation2 + $0x58] sm:$0xff] %vm92_vm0, %v527_v50 }
 0x193   :  { %542 = vst.msk [vmem:[#allocation2 + $0x48] sm:$0xff] %vm92_vm0, %v525_v52 }
 0x1a9   :  { %v1112_v55 = vpop.f32.mrb[4].mxu0 }
 0x1aa   :  { %v522_v57 = vadd.f32 %v1112_v55, %v345_v53  ;;  %v469_v58 = vpop.f32.mrb[5].mxu0 }
 0x1ab   :  { %v520_v60 = vadd.f32 %v469_v58, %v343_v54  ;;  %v1113_v61 = vpop.f32.mrb[6].mxu0 }
 0x1ac   :  { %539 = vst.msk [vmem:[#allocation2 + $0x30] sm:$0xff] %vm92_vm0, %v522_v57  ;;  %v523_v63 = vadd.f32 %v1113_v61, %v346_v56  ;;  %v472_v0 = vpop.f32.mrb[7].mxu0 }
 0x1ad   :  { %537 = vst.msk [vmem:[#allocation2 + $0x20] sm:$0xff] %vm92_vm0, %v520_v60  ;;  %v521_v2 = vadd.f32 %v472_v0, %v344_v59  ;;  %v1120_v3 = vpop.f32.mrb[4].mxu1 }
 0x1ae   :  { %540 = vst.msk [vmem:[#allocation2 + $0x38] sm:$0xff] %vm92_vm0, %v523_v63  ;;  %v530_v5 = vadd.f32 %v1120_v3, %v353_v62  ;;  %v501_v6 = vpop.f32.mrb[5].mxu1 }
 0x1af   :  { %538 = vst.msk [vmem:[#allocation2 + $0x28] sm:$0xff] %vm92_vm0, %v521_v2  ;;  %v528_v8 = vadd.f32 %v501_v6, %v351_v1  ;;  %v1121_v9 = vpop.f32.mrb[6].mxu1 }
 0x1b0   :  { %547 = vst.msk [vmem:[#allocation2 + $0x70] sm:$0xff] %vm92_vm0, %v530_v5  ;;  %v531_v10 = vadd.f32 %v1121_v9, %v354_v4  ;;  %v504_v11 = vpop.f32.mrb[7].mxu1 }
 0x1b1   :  { %545 = vst.msk [vmem:[#allocation2 + $0x60] sm:$0xff] %vm92_vm0, %v528_v8  ;;  %v529_v12 = vadd.f32 %v504_v11, %v352_v7 }
 0x1b2   :  { %548 = vst.msk [vmem:[#allocation2 + $0x78] sm:$0xff] %vm92_vm0, %v531_v10 }
 0x1b3   :  { %546 = vst.msk [vmem:[#allocation2 + $0x68] sm:$0xff] %vm92_vm0, %v529_v12 }
 0x1b4 PF:  { %v570_v13 = vld [vmem:[%s1803_s3 + $0x10] sm:$0xff]  ;;  %v568_v14 = vld [vmem:[%s1803_s3] sm:$0xff]  ;;  %v1205_v15 = vmov 0   ;;  %v571_v16 = vld [vmem:[%s1803_s3 + $0x18] sm:$0xff] }
 0x1b5   :  { %1154 = vset.pattern.permute.xlu1 %v1205_v15  ;;  %1153 = vset.pattern.permute.xlu0 %v1205_v15  ;;  %v569_v17 = vld [vmem:[%s1803_s3 + $0x8] sm:$0xff]  ;;  %v572_v19 = vld [vmem:[%s1803_s3 + $0x20] sm:$0xff]  ;;  %v575_v20 = vld [vmem:[%s1803_s3 + $0x38] sm:$0xff] }
 0x1b6   :  { %596 = vperm.xlu1 %1154, %v570_v13   ;;  %586 = vperm.xlu0 %1153, %v568_v14   ;;  %v573_v18 = vld [vmem:[%s1803_s3 + $0x28] sm:$0xff]  ;;  %v574_v21 = vld [vmem:[%s1803_s3 + $0x30] sm:$0xff]  ;;  %v576_v23 = vld [vmem:[%s1803_s3 + $0x40] sm:$0xff] }
 0x1b7   :  { %v577_v22 = vld [vmem:[%s1803_s3 + $0x48] sm:$0xff]  ;;  %v579_v24 = vld [vmem:[%s1803_s3 + $0x58] sm:$0xff]  ;;  %v578_v25 = vld [vmem:[%s1803_s3 + $0x50] sm:$0xff] }
 0x1b8   :  { %v581_v26 = vld [vmem:[%s1803_s3 + $0x68] sm:$0xff]  ;;  %v580_v27 = vld [vmem:[%s1803_s3 + $0x60] sm:$0xff]  ;;  %v583_v28 = vld [vmem:[%s1803_s3 + $0x78] sm:$0xff] }
 0x1b9   :  { %v582_v29 = vld [vmem:[%s1803_s3 + $0x70] sm:$0xff]  ;;  %v1467_v30 = vld [vmem:[%s1805_s5 + $0x8] sm:$0xff]  ;;  %v1474_v32 = vld [vmem:[%s1805_s5 + $0x18] sm:$0xff] }
 0x1ba   :  { %601 = vperm.xlu1 %1154, %v571_v16   ;;  %591 = vperm.xlu0 %1153, %v569_v17   ;;  %v874_v31 = vmul.f32 %v1467_v30, %v1467_v30  ;;  %v1479_v33 = vld [vmem:[%s1805_s5] sm:$0xff]  ;;  %v876_v35 = vmul.f32 %v1474_v32, %v1474_v32  ;;  %v1489_v37 = vld [vmem:[%s1805_s5 + $0x28] sm:$0xff]  ;;  %v1494_v38 = vld [vmem:[%s1805_s5 + $0x10] sm:$0xff] }
 0x1bb   :  { %v873_v36 = vmul.f32 %v1479_v33, %v1479_v33  ;;  %v878_v40 = vmul.f32 %v1489_v37, %v1489_v37  ;;  %v875_v42 = vmul.f32 %v1494_v38, %v1494_v38  ;;  %v1505_v43 = vld [vmem:[%s1805_s5 + $0x38] sm:$0xff]  ;;  %v1510_v44 = vld [vmem:[%s1805_s5 + $0x20] sm:$0xff]  ;;  %v1521_v49 = vld [vmem:[%s1805_s5 + $0x48] sm:$0xff] }
 0x1bc   :  { %v892_v34 = vsel %vm92_vm0, %v874_v31, 0.0  ;;  %v898_v39 = vsel %vm92_vm0, %v876_v35, 0.0  ;;  %v880_v46 = vmul.f32 %v1505_v43, %v1505_v43  ;;  %v877_v48 = vmul.f32 %v1510_v44, %v1510_v44  ;;  %v1526_v50 = vld [vmem:[%s1805_s5 + $0x30] sm:$0xff]  ;;  %v1537_v55 = vld [vmem:[%s1805_s5 + $0x58] sm:$0xff]  ;;  %v1542_v56 = vld [vmem:[%s1805_s5 + $0x40] sm:$0xff] }
 0x1bd   :  { %v889_v41 = vsel %vm92_vm0, %v873_v36, 0.0  ;;  %v904_v45 = vsel %vm92_vm0, %v878_v40, 0.0  ;;  %v895_v47 = vsel %vm92_vm0, %v875_v42, 0.0  ;;  %v882_v52 = vmul.f32 %v1521_v49, %v1521_v49  ;;  %v1553_v61 = vld [vmem:[%s1805_s5 + $0x68] sm:$0xff]  ;;  %v1558_v62 = vld [vmem:[%s1805_s5 + $0x50] sm:$0xff]  ;;  %v1569_v3 = vld [vmem:[%s1805_s5 + $0x78] sm:$0xff] }
 0x1be   :  { %611 = vperm.xlu1 %1154, %v573_v18   ;;  %606 = vperm.xlu0 %1153, %v572_v19   ;;  %v910_v51 = vsel %vm92_vm0, %v880_v46, 0.0  ;;  %v901_v53 = vsel %vm92_vm0, %v877_v48, 0.0  ;;  %v879_v54 = vmul.f32 %v1526_v50, %v1526_v50  ;;  %v884_v58 = vmul.f32 %v1537_v55, %v1537_v55  ;;  %v1574_v4 = vld [vmem:[%s1805_s5 + $0x60] sm:$0xff]  ;;  %v1585_v9 = vld [vmem:[%s1805_s5 + $0x70] sm:$0xff] }
 0x1bf   :  { %v916_v57 = vsel %vm92_vm0, %v882_v52, 0.0  ;;  %v881_v60 = vmul.f32 %v1542_v56, %v1542_v56  ;;  %v886_v0 = vmul.f32 %v1553_v61, %v1553_v61  ;;  %v883_v2 = vmul.f32 %v1558_v62, %v1558_v62  ;;  %v682_v14 = vld [vmem:[%s1804_s4 + $0x10] sm:$0xff]  ;;  %v680_v15 = vld [vmem:[%s1804_s4] sm:$0xff] }
 0x1c0   :  { %v907_v59 = vsel %vm92_vm0, %v879_v54, 0.0  ;;  %v922_v63 = vsel %vm92_vm0, %v884_v58, 0.0  ;;  %v888_v6 = vmul.f32 %v1569_v3, %v1569_v3  ;;  %v885_v8 = vmul.f32 %v1574_v4, %v1574_v4  ;;  %v554_v16 = vld [vmem:[#allocation2 + $0x10] sm:$0xff]  ;;  %v552_v17 = vld [vmem:[#allocation2] sm:$0xff]  ;;  %v557_v58 = vld [vmem:[#allocation2 + $0x28] sm:$0xff] }
 0x1c1   :  { %v913_v1 = vsel %vm92_vm0, %v881_v60, 0.0  ;;  %v928_v5 = vsel %vm92_vm0, %v886_v0, 0.0  ;;  %v919_v7 = vsel %vm92_vm0, %v883_v2, 0.0  ;;  %v887_v12 = vmul.f32 %v1585_v9, %v1585_v9 }
 0x1c2   :  { %621 = vperm.xlu1 %1154, %v575_v20   ;;  %616 = vperm.xlu0 %1153, %v574_v21   ;;  %v934_v10 = vsel %vm92_vm0, %v888_v6, 0.0  ;;  %v925_v11 = vsel %vm92_vm0, %v885_v8, 0.0  ;;  %v698_v18 = vmul.f32 0.5, %v682_v14  ;;  %v696_v19 = vmul.f32 0.5, %v680_v15  ;;  %v687_v8 = vld [vmem:[%s1804_s4 + $0x38] sm:$0xff] }
 0x1c3   :  { %v931_v13 = vsel %vm92_vm0, %v887_v12, 0.0  ;;  %v559_v14 = vld [vmem:[#allocation2 + $0x38] sm:$0xff] }
 0x1c6   :  { %631 = vperm.xlu1 %1154, %v577_v22   ;;  %626 = vperm.xlu0 %1153, %v576_v23   ;;  %v683_v22 = vld [vmem:[%s1804_s4 + $0x18] sm:$0xff]  ;;  %v681_v23 = vld [vmem:[%s1804_s4 + $0x8] sm:$0xff] }
 0x1c7   :  { %v699_v31 = vmul.f32 0.5, %v683_v22 }
 0x1ca   :  { %641 = vperm.xlu1 %1154, %v579_v24   ;;  %636 = vperm.xlu0 %1153, %v578_v25  }
 0x1ce   :  { %651 = vperm.xlu1 %1154, %v581_v26   ;;  %646 = vperm.xlu0 %1153, %v580_v27   ;;  %v555_v26 = vld [vmem:[#allocation2 + $0x18] sm:$0xff]  ;;  %v553_v27 = vld [vmem:[#allocation2 + $0x8] sm:$0xff] }
 0x1d2   :  { %661 = vperm.xlu1 %1154, %v583_v28   ;;  %656 = vperm.xlu0 %1153, %v582_v29  }
 0x1f1   :  { %893 = vadd.xlane.f32.xlu0 %v892_v34  ;;  %v697_v34 = vmul.f32 0.5, %v681_v23 }
 0x1f5   :  { %899 = vadd.xlane.f32.xlu0 %v898_v39 }
 0x1f6   :  { %890 = vadd.xlane.f32.xlu1 %v889_v41 }
 0x1f9   :  { %905 = vadd.xlane.f32.xlu0 %v904_v45 }
 0x1fa   :  { %896 = vadd.xlane.f32.xlu1 %v895_v47 }
 0x1fd   :  { %911 = vadd.xlane.f32.xlu0 %v910_v51  ;;  %v684_v51 = vld [vmem:[%s1804_s4 + $0x20] sm:$0xff] }
 0x1fe   :  { %902 = vadd.xlane.f32.xlu1 %v901_v53  ;;  %v556_v53 = vld [vmem:[#allocation2 + $0x20] sm:$0xff] }
 0x201   :  { %917 = vadd.xlane.f32.xlu0 %v916_v57 }
 0x202   :  { %908 = vadd.xlane.f32.xlu1 %v907_v59  ;;  %v700_v59 = vmul.f32 0.5, %v684_v51  ;;  %v692_v51 = vld [vmem:[%s1804_s4 + $0x60] sm:$0xff] }
 0x205   :  { %923 = vadd.xlane.f32.xlu0 %v922_v63  ;;  %v686_v63 = vld [vmem:[%s1804_s4 + $0x30] sm:$0xff] }
 0x206   :  { %914 = vadd.xlane.f32.xlu1 %v913_v1 }
 0x209   :  { %929 = vadd.xlane.f32.xlu0 %v928_v5  ;;  %v558_v5 = vld [vmem:[#allocation2 + $0x30] sm:$0xff] }
 0x20a   :  { %920 = vadd.xlane.f32.xlu1 %v919_v7 }
 0x20d   :  { %935 = vadd.xlane.f32.xlu0 %v934_v10  ;;  %v702_v10 = vmul.f32 0.5, %v686_v63 }
 0x20e   :  { %926 = vadd.xlane.f32.xlu1 %v925_v11  ;;  %v688_v11 = vld [vmem:[%s1804_s4 + $0x40] sm:$0xff] }
 0x20f   :  { %v704_v22 = vmul.f32 0.5, %v688_v11  ;;  %v565_v11 = vld [vmem:[#allocation2 + $0x68] sm:$0xff] }
 0x212   :  { %932 = vadd.xlane.f32.xlu1 %v931_v13 }
 0x235   :  { %v597_v20 = vpop.permute.xlu1 %596  ;;  %v587_v21 = vpop.permute.xlu0 %586 }
 0x236   :  { %v666_v24 = vmul.f32 %v597_v20, %v554_v16  ;;  %v664_v25 = vmul.f32 %v587_v21, %v552_v17  ;;  %v560_v20 = vld [vmem:[#allocation2 + $0x40] sm:$0xff]  ;;  %v703_v21 = vmul.f32 0.5, %v687_v8 }
 0x238   :  { %v714_v28 = vadd.f32 %v698_v18, %v666_v24  ;;  %v712_v29 = vadd.f32 %v696_v19, %v664_v25  ;;  %v689_v25 = vld [vmem:[%s1804_s4 + $0x48] sm:$0xff] }
 0x239   :  { %v602_v35 = vpop.permute.xlu1 %601  ;;  %v592_v36 = vpop.permute.xlu0 %591 }
 0x23a   :  { %v667_v39 = vmul.f32 %v602_v35, %v555_v26  ;;  %v665_v40 = vmul.f32 %v592_v36, %v553_v27  ;;  %v744_v41 = vmul.f32 %v1479_v33, %v712_v29  ;;  %v746_v42 = vmul.f32 %v1494_v38, %v714_v28  ;;  %v685_v33 = vld [vmem:[%s1804_s4 + $0x28] sm:$0xff]  ;;  %v690_v26 = vld [vmem:[%s1804_s4 + $0x50] sm:$0xff] }
 0x23b   :  { %v809_v38 = vmul.f32 %v712_v29, %v712_v29  ;;  %v701_v6 = vmul.f32 0.5, %v685_v33  ;;  %v811_v13 = vmul.f32 %v714_v28, %v714_v28 }
 0x23c   :  { %v715_v45 = vadd.f32 %v699_v31, %v667_v39  ;;  %v713_v46 = vadd.f32 %v697_v34, %v665_v40  ;;  %v761_v47 = vsel %vm92_vm0, %v744_v41, 0.0  ;;  %v767_v57 = vsel %vm92_vm0, %v746_v42, 0.0  ;;  %v561_v31 = vld [vmem:[#allocation2 + $0x48] sm:$0xff]  ;;  %v562_v41 = vld [vmem:[#allocation2 + $0x50] sm:$0xff] }
 0x23d   :  { %v612_v48 = vpop.permute.xlu1 %611  ;;  %v607_v52 = vpop.permute.xlu0 %606  ;;  %762 = vadd.xlane.f32.xlu0 %v761_v47  ;;  %v825_v12 = vsel %vm92_vm0, %v809_v38, 0.0  ;;  %v831_v27 = vsel %vm92_vm0, %v811_v13, 0.0  ;;  %v705_v42 = vmul.f32 0.5, %v689_v25  ;;  %v695_v25 = vld [vmem:[%s1804_s4 + $0x78] sm:$0xff] }
 0x23e   :  { %v745_v54 = vmul.f32 %v1467_v30, %v713_v46  ;;  %v668_v60 = vmul.f32 %v607_v52, %v556_v53  ;;  %v747_v1 = vmul.f32 %v1474_v32, %v715_v45  ;;  %v669_v7 = vmul.f32 %v612_v48, %v557_v58 }
 0x23f   :  { %v810_v17 = vmul.f32 %v713_v46, %v713_v46  ;;  %v812_v28 = vmul.f32 %v715_v45, %v715_v45  ;;  %v706_v46 = vmul.f32 0.5, %v690_v26  ;;  %v691_v45 = vld [vmem:[%s1804_s4 + $0x58] sm:$0xff] }
 0x240   :  { %v764_v0 = vsel %vm92_vm0, %v745_v54, 0.0  ;;  %v1627_v32 = vadd.f32 %v700_v59, %v668_v60  ;;  %v770_v16 = vsel %vm92_vm0, %v747_v1, 0.0  ;;  %v1630_v23 = vadd.f32 %v701_v6, %v669_v7  ;;  %v564_v60 = vld [vmem:[#allocation2 + $0x60] sm:$0xff]  ;;  %v694_v6 = vld [vmem:[%s1804_s4 + $0x70] sm:$0xff] }
 0x241   :  { %v622_v2 = vpop.permute.xlu1 %621  ;;  %v617_v30 = vpop.permute.xlu0 %616  ;;  %765 = vadd.xlane.f32.xlu1 %v764_v0  ;;  %768 = vadd.xlane.f32.xlu0 %v767_v57  ;;  %v828_v35 = vsel %vm92_vm0, %v810_v17, 0.0  ;;  %v834_v52 = vsel %vm92_vm0, %v812_v28, 0.0  ;;  %v563_v57 = vld [vmem:[#allocation2 + $0x58] sm:$0xff]  ;;  %v707_v63 = vmul.f32 0.5, %v691_v45  ;;  %v708_v0 = vmul.f32 0.5, %v692_v51 }
 0x242   :  { %v670_v15 = vmul.f32 %v617_v30, %v558_v5  ;;  %v671_v24 = vmul.f32 %v622_v2, %v559_v14  ;;  %v813_v36 = vmul.f32 %v1627_v32, %v1627_v32  ;;  %v814_v53 = vmul.f32 %v1630_v23, %v1630_v23  ;;  %v693_v30 = vld [vmem:[%s1804_s4 + $0x68] sm:$0xff] }
 0x243   :  { %v709_v17 = vmul.f32 0.5, %v693_v30 }
 0x244   :  { %v1639_v29 = vadd.f32 %v702_v10, %v670_v15  ;;  %v1644_v47 = vadd.f32 %v703_v21, %v671_v24  ;;  %v837_v38 = vsel %vm92_vm0, %v813_v36, 0.0  ;;  %v840_v7 = vsel %vm92_vm0, %v814_v53, 0.0 }
 0x245   :  { %v632_v18 = vpop.permute.xlu1 %631  ;;  %v627_v19 = vpop.permute.xlu0 %626  ;;  %826 = vadd.xlane.f32.xlu1 %v825_v12  ;;  %771 = vadd.xlane.f32.xlu0 %v770_v16  ;;  %v566_v16 = vld [vmem:[#allocation2 + $0x70] sm:$0xff]  ;;  %v711_v36 = vmul.f32 0.5, %v695_v25 }
 0x246   :  { %v672_v34 = vmul.f32 %v627_v19, %v560_v20  ;;  %v673_v48 = vmul.f32 %v632_v18, %v561_v31  ;;  %v815_v58 = vmul.f32 %v1639_v29, %v1639_v29  ;;  %v816_v8 = vmul.f32 %v1644_v47, %v1644_v47 }
 0x247   :  { %v710_v18 = vmul.f32 0.5, %v694_v6 }
 0x248   :  { %v1655_v54 = vadd.f32 %v704_v22, %v672_v34  ;;  %v1660_v1 = vadd.f32 %v705_v42, %v673_v48  ;;  %v843_v13 = vsel %vm92_vm0, %v815_v58, 0.0  ;;  %v846_v21 = vsel %vm92_vm0, %v816_v8, 0.0  ;;  %v567_v34 = vld [vmem:[#allocation2 + $0x78] sm:$0xff] }
 0x249   :  { %v642_v39 = vpop.permute.xlu1 %641  ;;  %v637_v40 = vpop.permute.xlu0 %636  ;;  %832 = vadd.xlane.f32.xlu1 %v831_v27  ;;  %829 = vadd.xlane.f32.xlu0 %v828_v35  ;;  %v748_v58 = vmul.f32 %v1510_v44, %v1627_v32  ;;  %v751_v32 = vmul.f32 %v1505_v43, %v1644_v47 }
 0x24a   :  { %v674_v33 = vmul.f32 %v637_v40, %v562_v41  ;;  %v675_v2 = vmul.f32 %v642_v39, %v563_v57  ;;  %v817_v14 = vmul.f32 %v1655_v54, %v1655_v54  ;;  %v818_v22 = vmul.f32 %v1660_v1, %v1660_v1 }
 0x24b   :  { %v752_v44 = vmul.f32 %v1542_v56, %v1655_v54 }
 0x24c   :  { %v722_v10 = vadd.f32 %v706_v46, %v674_v33  ;;  %v723_v19 = vadd.f32 %v707_v63, %v675_v2  ;;  %v849_v27 = vsel %vm92_vm0, %v817_v14, 0.0  ;;  %v852_v39 = vsel %vm92_vm0, %v818_v22, 0.0 }
 0x24d   :  { %v647_v59 = vpop.permute.xlu0 %646  ;;  %838 = vadd.xlane.f32.xlu1 %v837_v38  ;;  %835 = vadd.xlane.f32.xlu0 %v834_v52  ;;  %v652_v5 = vpop.permute.xlu1 %651  ;;  %v749_v2 = vmul.f32 %v1489_v37, %v1630_v23  ;;  %v785_v6 = vsel %vm92_vm0, %v752_v44, 0.0  ;;  %v753_v23 = vmul.f32 %v1521_v49, %v1660_v1 }
 0x24e   :  { %v676_v12 = vmul.f32 %v647_v59, %v564_v60  ;;  %v677_v20 = vmul.f32 %v652_v5, %v565_v11  ;;  %v819_v28 = vmul.f32 %v722_v10, %v722_v10  ;;  %v820_v40 = vmul.f32 %v723_v19, %v723_v19 }
 0x24f   :  { %v773_v60 = vsel %vm92_vm0, %v748_v58, 0.0  ;;  %v776_v5 = vsel %vm92_vm0, %v749_v2, 0.0  ;;  %v754_v37 = vmul.f32 %v1558_v62, %v722_v10  ;;  %v788_v56 = vsel %vm92_vm0, %v753_v23, 0.0 }
 0x250   :  { %v724_v24 = vadd.f32 %v708_v0, %v676_v12  ;;  %v725_v35 = vadd.f32 %v709_v17, %v677_v20  ;;  %v855_v46 = vsel %vm92_vm0, %v819_v28, 0.0  ;;  %v858_v45 = vsel %vm92_vm0, %v820_v40, 0.0 }
 0x251   :  { %v657_v15 = vpop.permute.xlu0 %656  ;;  %844 = vadd.xlane.f32.xlu1 %v843_v13  ;;  %841 = vadd.xlane.f32.xlu0 %v840_v7  ;;  %v662_v31 = vpop.permute.xlu1 %661  ;;  %v750_v0 = vmul.f32 %v1526_v50, %v1639_v29  ;;  %v782_v50 = vsel %vm92_vm0, %v751_v32, 0.0  ;;  %v791_v29 = vsel %vm92_vm0, %v754_v37, 0.0  ;;  %v755_v43 = vmul.f32 %v1537_v55, %v723_v19 }
 0x252   :  { %v678_v26 = vmul.f32 %v657_v15, %v566_v16  ;;  %v679_v41 = vmul.f32 %v662_v31, %v567_v34  ;;  %v821_v48 = vmul.f32 %v724_v24, %v724_v24  ;;  %v822_v57 = vmul.f32 %v725_v35, %v725_v35 }
 0x253   :  { %v779_v30 = vsel %vm92_vm0, %v750_v0, 0.0  ;;  %v756_v54 = vmul.f32 %v1574_v4, %v724_v24  ;;  %v794_v7 = vsel %vm92_vm0, %v755_v43, 0.0  ;;  %v757_v49 = vmul.f32 %v1553_v61, %v725_v35 }
 0x254   :  { %v726_v42 = vadd.f32 %v710_v18, %v678_v26  ;;  %v727_v51 = vadd.f32 %v711_v36, %v679_v41  ;;  %v861_v52 = vsel %vm92_vm0, %v821_v48, 0.0  ;;  %v864_v38 = vsel %vm92_vm0, %v822_v57, 0.0 }
 0x255   :  { %850 = vadd.xlane.f32.xlu1 %v849_v27  ;;  %847 = vadd.xlane.f32.xlu0 %v846_v21  ;;  %v797_v47 = vsel %vm92_vm0, %v756_v54, 0.0  ;;  %v800_v8 = vsel %vm92_vm0, %v757_v49, 0.0 }
 0x256   :  { %v823_v53 = vmul.f32 %v726_v42, %v726_v42  ;;  %v824_v59 = vmul.f32 %v727_v51, %v727_v51  ;;  %v758_v62 = vmul.f32 %v1585_v9, %v726_v42  ;;  %v759_v4 = vmul.f32 %v1569_v3, %v727_v51 }
 0x258   :  { %v867_v33 = vsel %vm92_vm0, %v823_v53, 0.0  ;;  %v870_v63 = vsel %vm92_vm0, %v824_v59, 0.0  ;;  %v803_v1 = vsel %vm92_vm0, %v758_v62, 0.0  ;;  %v806_v55 = vsel %vm92_vm0, %v759_v4, 0.0 }
 0x259   :  { %856 = vadd.xlane.f32.xlu1 %v855_v46  ;;  %853 = vadd.xlane.f32.xlu0 %v852_v39  ;;  %vm1001_vm0 = vcmask 7168  }
 0x25d   :  { %862 = vadd.xlane.f32.xlu1 %v861_v52  ;;  %859 = vadd.xlane.f32.xlu0 %v858_v45 }
 0x261   :  { %868 = vadd.xlane.f32.xlu1 %v867_v33  ;;  %865 = vadd.xlane.f32.xlu0 %v864_v38 }
 0x265   :  { %774 = vadd.xlane.f32.xlu1 %v773_v60  ;;  %871 = vadd.xlane.f32.xlu0 %v870_v63 }
 0x269   :  { %780 = vadd.xlane.f32.xlu1 %v779_v30  ;;  %777 = vadd.xlane.f32.xlu0 %v776_v5 }
 0x26d   :  { %786 = vadd.xlane.f32.xlu1 %v785_v6  ;;  %783 = vadd.xlane.f32.xlu0 %v782_v50 }
 0x271   :  { %792 = vadd.xlane.f32.xlu1 %v791_v29  ;;  %789 = vadd.xlane.f32.xlu0 %v788_v56 }
 0x275   :  { %798 = vadd.xlane.f32.xlu1 %v797_v47  ;;  %795 = vadd.xlane.f32.xlu0 %v794_v7 }
 0x279   :  { %804 = vadd.xlane.f32.xlu1 %v803_v1  ;;  %801 = vadd.xlane.f32.xlu0 %v800_v8 }
 0x27d   :  { %807 = vadd.xlane.f32.xlu0 %v806_v55 }
 0x27e   :  { %v894_v10 = vpop.xlane.xlu0 %893 }
 0x282   :  { %v900_v12 = vpop.xlane.xlu0 %899 }
 0x283   :  { %v891_v11 = vpop.xlane.xlu1 %890 }
 0x286   :  { %v906_v9 = vpop.xlane.xlu0 %905 }
 0x287   :  { %v897_v13 = vpop.xlane.xlu1 %896 }
 0x28a   :  { %v912_v61 = vpop.xlane.xlu0 %911 }
 0x28b   :  { %v903_v14 = vpop.xlane.xlu1 %902 }
 0x28e   :  { %v1718_v16 = vpop.xlane.xlu0 %917 }
 0x28f   :  { %v909_v15 = vpop.xlane.xlu1 %908 }
 0x292   :  { %v1720_v18 = vpop.xlane.xlu0 %923 }
 0x293   :  { %v915_v17 = vpop.xlane.xlu1 %914 }
 0x296   :  { %v1722_v3 = vpop.xlane.xlu0 %929 }
 0x297   :  { %v921_v19 = vpop.xlane.xlu1 %920 }
 0x29a   :  { %v1726_v21 = vpop.xlane.xlu0 %935 }
 0x29b   :  { %v1724_v20 = vpop.xlane.xlu1 %926 }
 0x29f   :  { %v1728_v22 = vpop.xlane.xlu1 %932 }
 0x2ca   :  { %v763_v24 = vpop.xlane.xlu0 %762 }
 0x2ce   :  { %v766_v25 = vpop.xlane.xlu1 %765  ;;  %v769_v26 = vpop.xlane.xlu0 %768 }
 0x2d2   :  { %v827_v27 = vpop.xlane.xlu1 %826  ;;  %v772_v28 = vpop.xlane.xlu0 %771 }
 0x2d3   :  { %v937_v31 = vmul.f32 %v891_v11, %v827_v27 }
 0x2d5   :  { %v953_v34 = vmax.f32 %v937_v31, 1e-16 }
 0x2d6   :  { %v833_v35 = vpop.xlane.xlu1 %832  ;;  %v830_v36 = vpop.xlane.xlu0 %829 }
 0x2d7   :  { %1155 = vrsqrt.f32 %v953_v34  ;;  %v939_v39 = vmul.f32 %v897_v13, %v833_v35  ;;  %v938_v40 = vmul.f32 %v894_v10, %v830_v36 }
 0x2d9   :  { %v955_v41 = vmax.f32 %v939_v39, 1e-16  ;;  %v954_v42 = vmax.f32 %v938_v40, 1e-16 }
 0x2da   :  { %v839_v46 = vpop.xlane.xlu1 %838  ;;  %v836_v48 = vpop.xlane.xlu0 %835 }
 0x2db   :  { %1157 = vrsqrt.f32 %v955_v41  ;;  %v940_v45 = vmul.f32 %v900_v12, %v836_v48  ;;  %v941_v57 = vmul.f32 %v903_v14, %v839_v46 }
 0x2dc   :  { %1159 = vrsqrt.f32 %v954_v42 }
 0x2dd   :  { %v956_v51 = vmax.f32 %v940_v45, 1e-16  ;;  %v957_v63 = vmax.f32 %v941_v57, 1e-16 }
 0x2de   :  { %v845_v52 = vpop.xlane.xlu1 %844  ;;  %v842_v53 = vpop.xlane.xlu0 %841 }
 0x2df   :  { %1161 = vrsqrt.f32 %v956_v51  ;;  %v943_v60 = vmul.f32 %v909_v15, %v845_v52  ;;  %v942_v0 = vmul.f32 %v906_v9, %v842_v53 }
 0x2e0   :  { %1163 = vrsqrt.f32 %v957_v63 }
 0x2e1   :  { %v1156_v33 = vpop.eup %1155  ;;  %v959_v50 = vmax.f32 %v943_v60, 1e-16  ;;  %v958_v23 = vmax.f32 %v942_v0, 1e-16 }
 0x2e2   :  { %v985_v38 = vmul.f32 %v1156_v33, %v763_v24  ;;  %v851_v58 = vpop.xlane.xlu1 %850  ;;  %v848_v59 = vpop.xlane.xlu0 %847 }
 0x2e3   :  { %v945_v37 = vmul.f32 %v915_v17, %v851_v58  ;;  %v944_v29 = vmul.f32 %v912_v61, %v848_v59  ;;  %1165 = vrsqrt.f32 %v959_v50 }
 0x2e4   :  { %1002 = vst.msk [vmem:[%s1807_s7] sm:$0xff] %vm1001_vm0, %v985_v38  ;;  %1167 = vrsqrt.f32 %v958_v23 }
 0x2e5   :  { %v1158_v2 = vpop.eup %1157  ;;  %v961_v7 = vmax.f32 %v945_v37, 1e-16  ;;  %v960_v49 = vmax.f32 %v944_v29, 1e-16 }
 0x2e6   :  { %v1160_v30 = vpop.eup %1159  ;;  %v987_v5 = vmul.f32 %v1158_v2, %v769_v26  ;;  %v857_v44 = vpop.xlane.xlu1 %856 }
 0x2e7   :  { %v854_v32 = vpop.xlane.xlu0 %853  ;;  %v986_v6 = vmul.f32 %v1160_v30, %v766_v25  ;;  %v947_v62 = vmul.f32 %v921_v19, %v857_v44  ;;  %1169 = vrsqrt.f32 %v961_v7 }
 0x2e8   :  { %1004 = vst.msk [vmem:[%s1807_s7 + $0x10] sm:$0xff] %vm1001_vm0, %v987_v5  ;;  %v946_v1 = vmul.f32 %v1718_v16, %v854_v32  ;;  %1171 = vrsqrt.f32 %v960_v49 }
 0x2e9   :  { %1003 = vst.msk [vmem:[%s1807_s7 + $0x8] sm:$0xff] %vm1001_vm0, %v986_v6  ;;  %v1162_v56 = vpop.eup %1161  ;;  %v963_v55 = vmax.f32 %v947_v62, 1e-16 }
 0x2ea   :  { %v863_v54 = vpop.xlane.xlu1 %862  ;;  %v988_v47 = vmul.f32 %v1162_v56, %v772_v28  ;;  %v962_v11 = vmax.f32 %v946_v1, 1e-16  ;;  %v1164_v13 = vpop.eup %1163 }
 0x2eb   :  { %v860_v43 = vpop.xlane.xlu0 %859  ;;  %v949_v10 = vmul.f32 %v1724_v20, %v863_v54  ;;  %1173 = vrsqrt.f32 %v963_v55 }
 0x2ec   :  { %1005 = vst.msk [vmem:[%s1807_s7 + $0x18] sm:$0xff] %vm1001_vm0, %v988_v47  ;;  %v948_v12 = vmul.f32 %v1720_v18, %v860_v43  ;;  %1175 = vrsqrt.f32 %v962_v11 }
 0x2ed   :  { %v965_v61 = vmax.f32 %v949_v10, 1e-16  ;;  %v1166_v24 = vpop.eup %1165 }
 0x2ee   :  { %v869_v8 = vpop.xlane.xlu1 %868  ;;  %v964_v17 = vmax.f32 %v948_v12, 1e-16  ;;  %v1168_v20 = vpop.eup %1167 }
 0x2ef   :  { %v866_v4 = vpop.xlane.xlu0 %865  ;;  %v951_v15 = vmul.f32 %v1728_v22, %v869_v8  ;;  %1177 = vrsqrt.f32 %v965_v61 }
 0x2f0   :  { %v950_v19 = vmul.f32 %v1722_v3, %v866_v4  ;;  %1179 = vrsqrt.f32 %v964_v17 }
 0x2f1   :  { %v967_v26 = vmax.f32 %v951_v15, 1e-16  ;;  %v1170_v34 = vpop.eup %1169 }
 0x2f2   :  { %v775_v9 = vpop.xlane.xlu1 %774  ;;  %v966_v22 = vmax.f32 %v950_v19, 1e-16  ;;  %v1172_v3 = vpop.eup %1171 }
 0x2f3   :  { %v872_v14 = vpop.xlane.xlu0 %871  ;;  %v989_v16 = vmul.f32 %v1164_v13, %v775_v9  ;;  %1181 = vrsqrt.f32 %v967_v26 }
 0x2f4   :  { %v952_v31 = vmul.f32 %v1726_v21, %v872_v14  ;;  %1183 = vrsqrt.f32 %v966_v22 }
 0x2f5   :  { %1006 = vst.msk [vmem:[%s1807_s7 + $0x20] sm:$0xff] %vm1001_vm0, %v989_v16  ;;  %v1174_v21 = vpop.eup %1173 }
 0x2f6   :  { %v781_v18 = vpop.xlane.xlu1 %780  ;;  %v968_v41 = vmax.f32 %v952_v31, 1e-16  ;;  %v1176_v42 = vpop.eup %1175 }
 0x2f7   :  { %v778_v25 = vpop.xlane.xlu0 %777  ;;  %v991_v27 = vmul.f32 %v1166_v24, %v781_v18 }
 0x2f8   :  { %v990_v28 = vmul.f32 %v1168_v20, %v778_v25  ;;  %1185 = vrsqrt.f32 %v968_v41 }
 0x2f9   :  { %1008 = vst.msk [vmem:[%s1807_s7 + $0x30] sm:$0xff] %vm1001_vm0, %v991_v27  ;;  %v1178_v52 = vpop.eup %1177 }
 0x2fa   :  { %1007 = vst.msk [vmem:[%s1807_s7 + $0x28] sm:$0xff] %vm1001_vm0, %v990_v28  ;;  %v787_v35 = vpop.xlane.xlu1 %786  ;;  %v1180_v53 = vpop.eup %1179 }
 0x2fb   :  { %v784_v36 = vpop.xlane.xlu0 %783  ;;  %v993_v39 = vmul.f32 %v1170_v34, %v787_v35 }
 0x2fc   :  { %v992_v40 = vmul.f32 %v1172_v3, %v784_v36 }
 0x2fd   :  { %1010 = vst.msk [vmem:[%s1807_s7 + $0x40] sm:$0xff] %vm1001_vm0, %v993_v39  ;;  %v1182_v59 = vpop.eup %1181 }
 0x2fe   :  { %1009 = vst.msk [vmem:[%s1807_s7 + $0x38] sm:$0xff] %vm1001_vm0, %v992_v40  ;;  %v793_v46 = vpop.xlane.xlu1 %792  ;;  %v1184_v60 = vpop.eup %1183 }
 0x2ff   :  { %v790_v48 = vpop.xlane.xlu0 %789  ;;  %v995_v45 = vmul.f32 %v1174_v21, %v793_v46 }
 0x300   :  { %v994_v51 = vmul.f32 %v1176_v42, %v790_v48 }
 0x301   :  { %1012 = vst.msk [vmem:[%s1807_s7 + $0x50] sm:$0xff] %vm1001_vm0, %v995_v45 }
 0x302   :  { %1011 = vst.msk [vmem:[%s1807_s7 + $0x48] sm:$0xff] %vm1001_vm0, %v994_v51  ;;  %v799_v57 = vpop.xlane.xlu1 %798  ;;  %v1186_v5 = vpop.eup %1185 }
 0x303   :  { %v796_v33 = vpop.xlane.xlu0 %795  ;;  %v997_v38 = vmul.f32 %v1178_v52, %v799_v57 }
 0x304   :  { %v996_v58 = vmul.f32 %v1180_v53, %v796_v33 }
 0x305   :  { %1014 = vst.msk [vmem:[%s1807_s7 + $0x60] sm:$0xff] %vm1001_vm0, %v997_v38 }
 0x306   :  { %1013 = vst.msk [vmem:[%s1807_s7 + $0x58] sm:$0xff] %vm1001_vm0, %v996_v58  ;;  %v805_v63 = vpop.xlane.xlu1 %804 }
 0x307   :  { %v802_v0 = vpop.xlane.xlu0 %801  ;;  %v999_v2 = vmul.f32 %v1182_v59, %v805_v63 }
 0x308   :  { %v998_v30 = vmul.f32 %v1184_v60, %v802_v0 }
 0x309   :  { %1016 = vst.msk [vmem:[%s1807_s7 + $0x70] sm:$0xff] %vm1001_vm0, %v999_v2 }
 0x30a   :  { %1015 = vst.msk [vmem:[%s1807_s7 + $0x68] sm:$0xff] %vm1001_vm0, %v998_v30 }
 0x30b   :  { %v808_v44 = vpop.xlane.xlu0 %807 }
 0x30c   :  { %v1000_v32 = vmul.f32 %v1186_v5, %v808_v44 }
 0x30e   :  { %1017 = vst.msk [vmem:[%s1807_s7 + $0x78] sm:$0xff] %vm1001_vm0, %v1000_v32 }

</bundles_post_ra>
